<compile_context>
chip_gen: v7x
topology: tpu7x:2x2x1
jax: 0.10.0
libtpu: 0.0.40
codegen_flags: <defaults>
</compile_context>

<pallas_src>
import jax
import jax.numpy as jnp
from jax.experimental import pallas as pl
from jax.experimental.pallas import tpu as pltpu


def _mlp_kernel(x_ref, w1_ref, b1_ref, w2_ref, b2_ref, w3_ref, b3_ref, o_ref):
    # x arrives as f32; cast to bf16 on the VPU (huge slack) right before the MXU.
    x_bf = x_ref[...].astype(jnp.bfloat16)

    # Layer 1: [tb, D](bf16) @ [D, 128](bf16) -> f32 accumulate, + bias, ReLU.
    h1 = jnp.dot(x_bf, w1_ref[...], preferred_element_type=jnp.float32)
    h1 = jnp.maximum(h1 + b1_ref[...], 0.0)
    # TODO(synk): nn.Dropout(0.5) is identity in eval mode; training-mode random
    # masking is intentionally not applied here.

    # Layer 2: [tb, 128](bf16) @ [128, 64](bf16) -> f32 accumulate, + bias, ReLU.
    h2 = jnp.dot(h1.astype(jnp.bfloat16), w2_ref[...],
                 preferred_element_type=jnp.float32)
    h2 = jnp.maximum(h2 + b2_ref[...], 0.0)

    # Layer 3: N=1 matmul replaced with a VPU multiply + lane reduction
    # (w3_ref is the (1, 64) weight row); b3 is a scalar in SMEM.
    logits = jnp.sum(h2 * w3_ref[...], axis=-1, keepdims=True) + b3_ref[0, 0]

    # Sigmoid: exp on the EUP; exact reciprocal keeps outputs strictly in [0, 1].
    o_ref[...] = (pl.reciprocal(1.0 + jnp.exp(-logits), approx=False)
                  ).astype(o_ref.dtype)


def binary_classifier_forward(x, params, tile_b=2048):
    """x: [B, C, H, W] float32 (NCHW). Returns [B, 1] float32 sigmoid outputs.

    tile_b=2048 keeps the triple-buffered f32 x tiles (~24 MiB) + ~0.3 MiB of
    resident weights comfortably under the VMEM limit we request below on every
    generation (v5e/v6e: 128 MiB physical; v7x: 64 MiB physical per TC).
    """
    w1, b1, w2, b2, w3_row, b3 = params
    B = x.shape[0]
    x_flat = x.reshape(B, -1)          # same as x.view(x.size(0), -1)
    D = x_flat.shape[1]

    # Weights to bf16 once (tiny, VMEM-resident); x stays f32 and is cast in-kernel.
    w1_bf = w1.astype(jnp.bfloat16)
    w2_bf = w2.astype(jnp.bfloat16)

    if B <= tile_b:
        tb = B                          # full-dim block: no (8,128) constraint
    else:
        tb = max(8, tile_b - (tile_b % 8))
    n_tiles = pl.cdiv(B, tb)            # partial last block handled by Pallas masking

    # x stream buffering: 3-deep when the grid is long enough to benefit.
    n_buf = 3 if n_tiles >= 3 else 2
    if n_buf == 3:
        x_spec = pl.BlockSpec((tb, D), lambda i: (i, 0),
                              pipeline_mode=pl.Buffered(3))
    else:
        x_spec = pl.BlockSpec((tb, D), lambda i: (i, 0))

    # VMEM budget: x buffers + slack for weights/bias/output double-buffers.
    vmem_bytes = n_buf * tb * D * 4 + (4 << 20)
    vmem_limit = int(min(max(vmem_bytes, 32 << 20), 56 << 20))

    cost = pl.CostEstimate(
        flops=2 * B * (D * 128 + 128 * 64 + 64),
        transcendentals=B,
        bytes_accessed=(B * D * 4                   # x stream (f32, read once)
                        + (D * 128 + 128 * 64) * 2  # bf16 weights
                        + (128 + 64 + 64 + 1) * 4   # biases + w3 row (f32)
                        + B * 4),                   # output
    )

    out = pl.pallas_call(
        _mlp_kernel,
        out_shape=jax.ShapeDtypeStruct((B, 1), jnp.float32),
        grid_spec=pltpu.PrefetchScalarGridSpec(
            num_scalar_prefetch=0,
            grid=(n_tiles,),
            in_specs=[
                x_spec,                                             # x: streamed / pipelined
                pl.BlockSpec((D, 128), lambda i: (0, 0)),           # w1: VMEM-resident
                pl.BlockSpec((1, 128), lambda i: (0, 0)),           # b1
                pl.BlockSpec((128, 64), lambda i: (0, 0)),          # w2
                pl.BlockSpec((1, 64), lambda i: (0, 0)),            # b2
                pl.BlockSpec((1, 64), lambda i: (0, 0)),            # w3 (as row)
                pl.BlockSpec(memory_space=pltpu.MemorySpace.SMEM),  # b3 scalar
            ],
            out_specs=pl.BlockSpec((tb, 1), lambda i: (i, 0)),
        ),
        compiler_params=pltpu.CompilerParams(
            dimension_semantics=("parallel",),
            vmem_limit_bytes=vmem_limit,
        ),
        cost_estimate=cost,
    )(x_flat, w1_bf, b1, w2_bf, b2, w3_row, b3)

    return out


def init_params(key, input_size):
    """Deterministic init mimicking torch.nn.Linear default U(-1/sqrt(fan_in), 1/sqrt(fan_in))."""
    def linear(k, fan_in, fan_out):
        kw, kb = jax.random.split(k)
        bound = 1.0 / jnp.sqrt(fan_in)
        # stored as [in_features, out_features] so kernel does x @ W
        w = jax.random.uniform(kw, (fan_in, fan_out), jnp.float32, -bound, bound)
        b = jax.random.uniform(kb, (1, fan_out), jnp.float32, -bound, bound)
        return w, b

    k1, k2, k3 = jax.random.split(key, 3)
    w1, b1 = linear(k1, input_size, 128)
    w2, b2 = linear(k2, 128, 64)
    w3, b3 = linear(k3, 64, 1)
    w3_row = w3.T                      # (1, 64) row for the VPU reduction
    b3_scalar = b3.reshape(1, 1)       # (1, 1) scalar, lives in SMEM
    return (w1, b1, w2, b2, w3_row, b3_scalar)


if __name__ == "__main__":
    key = jax.random.PRNGKey(0)
    k_x, k_p = jax.random.split(key)

    # Small NCHW input: batch=2, channels=4, spatial=16x16 -> input_size = 1024
    B, C, H, W = 2, 4, 16, 16
    input_size = C * H * W

    x = jax.random.normal(k_x, (B, C, H, W), dtype=jnp.float32)
    params = init_params(k_p, input_size)

    y = binary_classifier_forward(x, params)
    y = jax.block_until_ready(y)

    assert y.shape == (B, 1), y.shape
    assert bool(jnp.all((y >= 0.0) & (y <= 1.0)))
    print("KERNEL_OK")
</pallas_src>

<mosaic_0001>
module attributes {stable_mosaic.version = 11 : i64} {
  func.func @_mlp_kernel(%arg0: i32, %arg1: memref<2x1024xf32, #tpu.memory_space<vmem>>, %arg2: memref<1024x128xbf16, #tpu.memory_space<vmem>>, %arg3: memref<1x128xf32, #tpu.memory_space<vmem>>, %arg4: memref<128x64xbf16, #tpu.memory_space<vmem>>, %arg5: memref<1x64xf32, #tpu.memory_space<vmem>>, %arg6: memref<1x64xf32, #tpu.memory_space<vmem>>, %arg7: memref<1x1xf32, #tpu.memory_space<smem>>, %arg8: memref<2x1xf32, #tpu.memory_space<vmem>>) attributes {dimension_semantics = [#tpu.dimension_semantics<parallel>], iteration_bounds = array<i64: 1>, scalar_prefetch = 0 : i64, scratch_operands = 0 : i64, tpu.core_type = #tpu.core_type<tc>, window_params = [{transform_indices = @transform_0, window_bounds = array<i64: 2, 1024>}, {pipeline_mode = #tpu.pipeline_mode<synchronous>, transform_indices = @transform_1, window_bounds = array<i64: 1024, 128>}, {pipeline_mode = #tpu.pipeline_mode<synchronous>, transform_indices = @transform_2, window_bounds = array<i64: 1, 128>}, {pipeline_mode = #tpu.pipeline_mode<synchronous>, transform_indices = @transform_3, window_bounds = array<i64: 128, 64>}, {pipeline_mode = #tpu.pipeline_mode<synchronous>, transform_indices = @transform_4, window_bounds = array<i64: 1, 64>}, {pipeline_mode = #tpu.pipeline_mode<synchronous>, transform_indices = @transform_5, window_bounds = array<i64: 1, 64>}, {transform_indices = @transform_6, window_bounds = array<i64: 1, 1>}, {transform_indices = @transform_7, window_bounds = array<i64: 2, 1>}]} {
    %c0 = arith.constant 0 : index
    %c0_0 = arith.constant 0 : index
    %0 = vector.load %arg1[%c0, %c0_0] : memref<2x1024xf32, #tpu.memory_space<vmem>>, vector<2x1024xf32>
    %1 = arith.truncf %0 : vector<2x1024xf32> to vector<2x1024xbf16>
    %c0_1 = arith.constant 0 : index
    %c0_2 = arith.constant 0 : index
    %2 = vector.load %arg2[%c0_1, %c0_2] : memref<1024x128xbf16, #tpu.memory_space<vmem>>, vector<1024x128xbf16>
    %cst = arith.constant dense<0.000000e+00> : vector<2x128xf32>
    %3 = tpu.matmul %1, %2, %cst {dimension_numbers = #tpu.dot_dimension_numbers<[1], [0], [0], [1], [0, 0, 1, 1], [], []>} : vector<2x1024xbf16>, vector<1024x128xbf16>, vector<2x128xf32> -> vector<2x128xf32>
    %c0_3 = arith.constant 0 : index
    %c0_4 = arith.constant 0 : index
    %4 = vector.load %arg3[%c0_3, %c0_4] : memref<1x128xf32, #tpu.memory_space<vmem>>, vector<1x128xf32>
    %5 = vector.broadcast %4 : vector<1x128xf32> to vector<2x128xf32>
    %6 = arith.addf %3, %5 : vector<2x128xf32>
    %cst_5 = arith.constant 0.000000e+00 : f32
    %7 = vector.broadcast %cst_5 : f32 to vector<2x128xf32>
    %8 = arith.maximumf %6, %7 : vector<2x128xf32>
    %9 = arith.truncf %8 : vector<2x128xf32> to vector<2x128xbf16>
    %c0_6 = arith.constant 0 : index
    %c0_7 = arith.constant 0 : index
    %10 = vector.load %arg4[%c0_6, %c0_7] : memref<128x64xbf16, #tpu.memory_space<vmem>>, vector<128x64xbf16>
    %cst_8 = arith.constant dense<0.000000e+00> : vector<2x64xf32>
    %11 = tpu.matmul %9, %10, %cst_8 {dimension_numbers = #tpu.dot_dimension_numbers<[1], [0], [0], [1], [0, 0, 1, 1], [], []>} : vector<2x128xbf16>, vector<128x64xbf16>, vector<2x64xf32> -> vector<2x64xf32>
    %c0_9 = arith.constant 0 : index
    %c0_10 = arith.constant 0 : index
    %12 = vector.load %arg5[%c0_9, %c0_10] : memref<1x64xf32, #tpu.memory_space<vmem>>, vector<1x64xf32>
    %13 = vector.broadcast %12 : vector<1x64xf32> to vector<2x64xf32>
    %14 = arith.addf %11, %13 : vector<2x64xf32>
    %cst_11 = arith.constant 0.000000e+00 : f32
    %15 = vector.broadcast %cst_11 : f32 to vector<2x64xf32>
    %16 = arith.maximumf %14, %15 : vector<2x64xf32>
    %c0_12 = arith.constant 0 : index
    %c0_13 = arith.constant 0 : index
    %17 = vector.load %arg6[%c0_12, %c0_13] : memref<1x64xf32, #tpu.memory_space<vmem>>, vector<1x64xf32>
    %18 = vector.broadcast %17 : vector<1x64xf32> to vector<2x64xf32>
    %19 = arith.mulf %16, %18 : vector<2x64xf32>
    %cst_14 = arith.constant dense<0.000000e+00> : vector<2xf32>
    %20 = vector.multi_reduction <add>, %19, %cst_14 [1] : vector<2x64xf32> to vector<2xf32>
    %21 = vector.shape_cast %20 : vector<2xf32> to vector<2x1xf32>
    %c0_15 = arith.constant 0 : index
    %c0_16 = arith.constant 0 : index
    %22 = memref.load %arg7[%c0_15, %c0_16] : memref<1x1xf32, #tpu.memory_space<smem>>
    %23 = vector.broadcast %22 : f32 to vector<2x1xf32>
    %24 = arith.addf %21, %23 : vector<2x1xf32>
    %cst_17 = arith.constant 0.000000e+00 : f32
    %25 = vector.broadcast %cst_17 : f32 to vector<2x1xf32>
    %26 = arith.subf %25, %24 : vector<2x1xf32>
    %27 = math.exp %26 : vector<2x1xf32>
    %cst_18 = arith.constant 1.000000e+00 : f32
    %28 = vector.broadcast %cst_18 : f32 to vector<2x1xf32>
    %29 = arith.addf %28, %27 : vector<2x1xf32>
    %30 = tpu.reciprocal %29 : vector<2x1xf32> -> vector<2x1xf32>
    %c0_19 = arith.constant 0 : index
    %c0_20 = arith.constant 0 : index
    %31 = vector.load %arg8[%c0_19, %c0_20] : memref<2x1xf32, #tpu.memory_space<vmem>>, vector<2x1xf32>
    tpu.vector_store %arg8[%c0_19, %c0_20], %30 {strides = array<i32>} : memref<2x1xf32, #tpu.memory_space<vmem>>, vector<2x1xf32>,
    return
  }
  func.func @transform_0(%arg0: i32) -> (i32, i32) {
    %c0_i32 = arith.constant 0 : i32
    %c0_i32_0 = arith.constant 0 : i32
    return %arg0, %c0_i32 : i32, i32
  }
  func.func @transform_1(%arg0: i32) -> (i32, i32) {
    %c0_i32 = arith.constant 0 : i32
    %c0_i32_0 = arith.constant 0 : i32
    %c0_i32_1 = arith.constant 0 : i32
    return %c0_i32, %c0_i32_0 : i32, i32
  }
  func.func @transform_2(%arg0: i32) -> (i32, i32) {
    %c0_i32 = arith.constant 0 : i32
    %c0_i32_0 = arith.constant 0 : i32
    %c0_i32_1 = arith.constant 0 : i32
    return %c0_i32, %c0_i32_0 : i32, i32
  }
  func.func @transform_3(%arg0: i32) -> (i32, i32) {
    %c0_i32 = arith.constant 0 : i32
    %c0_i32_0 = arith.constant 0 : i32
    %c0_i32_1 = arith.constant 0 : i32
    return %c0_i32, %c0_i32_0 : i32, i32
  }
  func.func @transform_4(%arg0: i32) -> (i32, i32) {
    %c0_i32 = arith.constant 0 : i32
    %c0_i32_0 = arith.constant 0 : i32
    %c0_i32_1 = arith.constant 0 : i32
    return %c0_i32, %c0_i32_0 : i32, i32
  }
  func.func @transform_5(%arg0: i32) -> (i32, i32) {
    %c0_i32 = arith.constant 0 : i32
    %c0_i32_0 = arith.constant 0 : i32
    %c0_i32_1 = arith.constant 0 : i32
    return %c0_i32, %c0_i32_0 : i32, i32
  }
  func.func @transform_6(%arg0: i32) -> (i32, i32) {
    %c0_i32 = arith.constant 0 : i32
    %c0_i32_0 = arith.constant 0 : i32
    %c0_i32_1 = arith.constant 0 : i32
    return %c0_i32, %c0_i32_0 : i32, i32
  }
  func.func @transform_7(%arg0: i32) -> (i32, i32) {
    %c0_i32 = arith.constant 0 : i32
    %c0_i32_0 = arith.constant 0 : i32
    return %arg0, %c0_i32 : i32, i32
  }
}

</mosaic_0001>

<bundles_post_ra>
// kernel: tpu_custom_call.1
= control target key start
LH: loop header
LB: loop body
LE: loop exit
PB: predicated region body
PF: predicated region fallthrough
CT: control target
= control target key end

     0   :  { %13 = vsyncpa [#allocation4], 0  ;;  %s1216_s24 = smov [#allocation3]   ;;  %s1325_s0 = inlined_call_operand.vmem [shape: f32[2,1024], index: 0, kind: input, shape index: {}]   ;;  %s1326_s1 = inlined_call_operand.hbm [shape: bf16[1024,128], index: 1, kind: input, shape index: {}]   ;;  %s1327_s2 = inlined_call_operand.vmem [shape: f32[1,128], index: 2, kind: input, shape index: {}]   ;;  %s1328_s3 = inlined_call_operand.vmem [shape: bf16[128,64], index: 3, kind: input, shape index: {}]   ;;  %s1329_s4 = inlined_call_operand.vmem [shape: f32[1,64], index: 4, kind: input, shape index: {}]   ;;  %s1330_s5 = inlined_call_operand.vmem [shape: f32[1,64], index: 5, kind: input, shape index: {}]   ;;  %s1331_s6 = inlined_call_operand.<no memory space> [shape: f32[1,1], index: 6, kind: input, shape index: {}]   ;;  %s1332_s7 = inlined_call_operand.vmem [shape: f32[2,1], index: 7, kind: output, shape index: {}]  }
   0x1   :  { %s21_s25 = sshll.u32 %s1216_s24, 4  ;;  %s1192_s28 = scalar_lea.hbm %s1326_s1, 8192  ;;  %s22_s25 = int_to_ptr.vmem [resolvable:$true] %s21_s25 }
   0x2   :  { %p1193_p0 = scmp.ne.s32.totalorder %s1326_s1, %s1192_s28  ;;  %p1196_p1 = scmp.lt.u32.totalorder %s1192_s28, %s1326_s1 }
   0x4   :  { %p1198_p2 = pnand %p1196_p1, %p1193_p0 }
   0x6   :  { %1201 = shalt.err (!%p1198_p2)
}
   0x7   :  { %s1202_s10 = scalar_lea.vmem %s22_s25, 8192  ;;  %p1207_p4 = scmp.lt.s32.totalorder %s22_s25, %s22_s25 }
   0x8   :  { %p1203_p3 = scmp.ne.s32.totalorder %s22_s25, %s1202_s10  ;;  %p1208_p5 = scmp.lt.s32.totalorder %s1202_s10, %s1202_s10 }
   0xa   :  { %p1209_p6 = por %p1208_p5, %p1207_p4 }
   0xc   :  { %p1210_p7 = pnand %p1209_p6, %p1203_p3 }
   0xe   :  { %1213 = shalt.err (!%p1210_p7)
}
   0xf   :  { %s1217_s11 = smov 64   ;;  %s1218_s12 = smov 4  }
  0x10   :  { %27 = dma.hbm_to_vmem [thread:$0]  %s1326_s1, 8192, %s22_s25, [#allocation4], %s1217_s11, %s1217_s11, %s1218_s12  }
  0x11   :  { %1214 = dma.done.wait [#allocation4], 8192  }
  0x12   :  { %1215 = vsyncadd [#allocation4], 4294959104  ;;  %v1114_v0 = vld [vmem:[#allocation3 + $0x40] sm:$0xff]   ;;  %v1118_v4 = vld [vmem:[#allocation3 + $0x48] sm:$0xff]   ;;  %v1219_v22 = vmov 1983009808   ;;  %v50_v24 = vlaneseq }
  0x13   :  { %v1115_v1 = vld [vmem:[#allocation3 + $0xc0] sm:$0xff]   ;;  %991 = vmatprep.subr.bf16.mxu0 %v1114_v0  ;;  %v1119_v5 = vld [vmem:[#allocation3 + $0xc8] sm:$0xff]   ;;  %v1122_v8 = vld [vmem:[#allocation3 + $0x50] sm:$0xff]   ;;  %v48_v23 = vunpack.c.l.s4 %v1219_v22  ;;  %vm1221_vm0 = vmmov 0   ;;  %vm897_vm1 = vcmask 517120   ;;  %vm909_vm2 = vcmask 1024  }
  0x14   :  { %v1116_v2 = vld [vmem:[#allocation3] sm:$0xff]   ;;  %1013 = vmatprep.subr.bf16.mxu1 %v1115_v1  ;;  %v1120_v6 = vld [vmem:[#allocation3 + $0x8] sm:$0xff]   ;;  %v1123_v9 = vld [vmem:[#allocation3 + $0xd0] sm:$0xff]   ;;  %v51_v30 = vshrl.u32 %v50_v24, 7 }
  0x15   :  { %v1117_v3 = vld [vmem:[#allocation3 + $0x80] sm:$0xff]   ;;  %992 = vmatpush3.bf16.msra.mxu0 %v1116_v2  ;;  %v1121_v7 = vld [vmem:[#allocation3 + $0x88] sm:$0xff]   ;;  %v1124_v10 = vld [vmem:[#allocation3 + $0x10] sm:$0xff]   ;;  %v49_v29 = vunpack.c.0.s8 %v48_v23 }
  0x16   :  { %1014 = vmatpush3.bf16.msra.mxu1 %v1117_v3  ;;  %993 = vmatprep.subr.bf16.mxu0 %v1118_v4  ;;  %v1125_v11 = vld [vmem:[#allocation3 + $0x90] sm:$0xff]   ;;  %v1126_v12 = vld [vmem:[#allocation3 + $0x58] sm:$0xff]   ;;  %v1130_v16 = vld [vmem:[#allocation3 + $0x60] sm:$0xff]  }
  0x17   :  { %1015 = vmatprep.subr.bf16.mxu1 %v1119_v5  ;;  %v1127_v13 = vld [vmem:[#allocation3 + $0xd8] sm:$0xff]   ;;  %v1131_v17 = vld [vmem:[#allocation3 + $0xe0] sm:$0xff]   ;;  %v1134_v20 = vld [vmem:[#allocation3 + $0x68] sm:$0xff]   ;;  %v1274_v35 = vsub.s32 %v49_v29, %v51_v30 }
  0x18   :  { %v1128_v14 = vld [vmem:[#allocation3 + $0x18] sm:$0xff]   ;;  %v1132_v18 = vld [vmem:[#allocation3 + $0x20] sm:$0xff]   ;;  %v1135_v21 = vld [vmem:[#allocation3 + $0xe8] sm:$0xff]  }
  0x19   :  { %994 = vmatpush3.bf16.msra.mxu0 %v1120_v6  ;;  %v1129_v15 = vld [vmem:[#allocation3 + $0x98] sm:$0xff]   ;;  %v1133_v19 = vld [vmem:[#allocation3 + $0xa0] sm:$0xff]   ;;  %v1136_v25 = vld [vmem:[#allocation3 + $0x28] sm:$0xff]  }
  0x1a   :  { %1016 = vmatpush3.bf16.msra.mxu1 %v1121_v7  ;;  %995 = vmatprep.subr.bf16.mxu0 %v1122_v8  ;;  %v1137_v26 = vld [vmem:[#allocation3 + $0xa8] sm:$0xff]   ;;  %v1138_v27 = vld [vmem:[#allocation3 + $0x70] sm:$0xff]   ;;  %v1142_v33 = vld [vmem:[#allocation3 + $0x78] sm:$0xff]  }
  0x1b   :  { %1017 = vmatprep.subr.bf16.mxu1 %v1123_v9  ;;  %v1139_v28 = vld [vmem:[#allocation3 + $0xf0] sm:$0xff]   ;;  %v1143_v34 = vld [vmem:[#allocation3 + $0xf8] sm:$0xff]   ;;  %v42_v38 = vld [vmem:[%s1325_s0] sm:$0xff] }
  0x1c   :  { %v1140_v31 = vld [vmem:[#allocation3 + $0x30] sm:$0xff]   ;;  %v1144_v36 = vld [vmem:[#allocation3 + $0x38] sm:$0xff]   ;;  %v53_v39 = vrot.slane %v42_v38, %v1274_v35  ;;  %v46_v40 = vcombine.high %v42_v38, %v42_v38  ;;  %v1147_v41 = vld [vmem:[#allocation3 + $0x140] sm:$0xff]  }
  0x1d   :  { %996 = vmatpush3.bf16.msra.mxu0 %v1124_v10  ;;  %v1141_v32 = vld [vmem:[#allocation3 + $0xb0] sm:$0xff]   ;;  %v1145_v37 = vld [vmem:[#allocation3 + $0xb8] sm:$0xff]   ;;  %v1148_v42 = vld [vmem:[#allocation3 + $0x1c0] sm:$0xff]  }
  0x1e   :  { %1018 = vmatpush3.bf16.msra.mxu1 %v1125_v11  ;;  %997 = vmatprep.subr.bf16.mxu0 %v1126_v12  ;;  %v61_v43 = vcombine.high %v53_v39, %v53_v39  ;;  %v60_v44 = vrot.slane %v46_v40, %v1274_v35  ;;  %v88_v45 = vpack.c.bf16 %v53_v39, %v53_v39  ;;  %v1149_v46 = vld [vmem:[#allocation3 + $0x100] sm:$0xff]   ;;  %v1151_v51 = vld [vmem:[#allocation3 + $0x148] sm:$0xff]   ;;  %v1155_v56 = vld [vmem:[#allocation3 + $0x150] sm:$0xff]  }
  0x1f   :  { %1019 = vmatprep.subr.bf16.mxu1 %v1127_v13  ;;  %v1150_v49 = vld [vmem:[#allocation3 + $0x180] sm:$0xff]   ;;  %v1152_v53 = vld [vmem:[#allocation3 + $0x1c8] sm:$0xff]   ;;  %v1156_v57 = vld [vmem:[#allocation3 + $0x1d0] sm:$0xff]  }
  0x20   :  { %v89_v47 = vpack.c.bf16 %v61_v43, %v61_v43  ;;  %v62_v48 = vcombine.high %v60_v44, %v60_v44  ;;  %v90_v50 = vpack.c.bf16 %v60_v44, %v60_v44  ;;  %v1153_v54 = vld [vmem:[#allocation3 + $0x108] sm:$0xff]   ;;  %v1157_v58 = vld [vmem:[#allocation3 + $0x110] sm:$0xff]   ;;  %v1159_v60 = vld [vmem:[#allocation3 + $0x158] sm:$0xff]  }
  0x21   :  { %998 = vmatpush3.bf16.msra.mxu0 %v1128_v14  ;;  %v1154_v55 = vld [vmem:[#allocation3 + $0x188] sm:$0xff]   ;;  %v1158_v59 = vld [vmem:[#allocation3 + $0x190] sm:$0xff]   ;;  %v1160_v61 = vld [vmem:[#allocation3 + $0x1d8] sm:$0xff]  }
  0x22   :  { %1020 = vmatpush3.bf16.msra.mxu1 %v1129_v15  ;;  %999 = vmatprep.subr.bf16.mxu0 %v1130_v16  ;;  %v91_v52 = vpack.c.bf16 %v62_v48, %v62_v48  ;;  %v1161_v62 = vld [vmem:[#allocation3 + $0x118] sm:$0xff]   ;;  %v1163_v0 = vld [vmem:[#allocation3 + $0x160] sm:$0xff]   ;;  %v1167_v4 = vld [vmem:[#allocation3 + $0x168] sm:$0xff]  }
  0x23   :  { %1021 = vmatprep.subr.bf16.mxu1 %v1131_v17  ;;  %647 = vmatprep.mubr.bf16.mxu0 %v89_v47  ;;  %v1162_v63 = vld [vmem:[#allocation3 + $0x198] sm:$0xff]   ;;  %v1164_v1 = vld [vmem:[#allocation3 + $0x1e0] sm:$0xff]   ;;  %v1168_v5 = vld [vmem:[#allocation3 + $0x1e8] sm:$0xff]  }
  0x24   :  { %687 = vmatprep.mubr.bf16.mxu1 %v91_v52  ;;  %v1165_v2 = vld [vmem:[#allocation3 + $0x120] sm:$0xff]   ;;  %v1169_v6 = vld [vmem:[#allocation3 + $0x128] sm:$0xff]   ;;  %v1171_v8 = vld [vmem:[#allocation3 + $0x170] sm:$0xff]  }
  0x25   :  { %1000 = vmatpush3.bf16.msra.mxu0 %v1132_v18  ;;  %v1166_v3 = vld [vmem:[#allocation3 + $0x1a0] sm:$0xff]   ;;  %v1170_v7 = vld [vmem:[#allocation3 + $0x1a8] sm:$0xff]   ;;  %v1172_v9 = vld [vmem:[#allocation3 + $0x1f0] sm:$0xff]  }
  0x26   :  { %1022 = vmatpush3.bf16.msra.mxu1 %v1133_v19  ;;  %1001 = vmatprep.subr.bf16.mxu0 %v1134_v20  ;;  %v1173_v10 = vld [vmem:[#allocation3 + $0x130] sm:$0xff]   ;;  %v1175_v12 = vld [vmem:[#allocation3 + $0x178] sm:$0xff]   ;;  %v43_v15 = vld [vmem:[%s1325_s0 + $0x8] sm:$0xff] }
  0x27   :  { %1023 = vmatprep.subr.bf16.mxu1 %v1135_v21  ;;  %v1174_v11 = vld [vmem:[#allocation3 + $0x1b0] sm:$0xff]   ;;  %v1176_v13 = vld [vmem:[#allocation3 + $0x1f8] sm:$0xff]   ;;  %v70_v17 = vrot.slane %v43_v15, %v1274_v35  ;;  %v63_v18 = vcombine.high %v43_v15, %v43_v15 }
  0x28   :  { %v1177_v14 = vld [vmem:[#allocation3 + $0x138] sm:$0xff]   ;;  %v1182_v29 = vld [vmem:[%s1328_s3 + $0x10] sm:$0xff]  }
  0x29   :  { %1002 = vmatpush3.bf16.msra.mxu0 %v1136_v25  ;;  %v1178_v16 = vld [vmem:[#allocation3 + $0x1b8] sm:$0xff]   ;;  %v78_v19 = vcombine.high %v70_v17, %v70_v17  ;;  %v77_v20 = vrot.slane %v63_v18, %v1274_v35  ;;  %v92_v21 = vpack.c.bf16 %v70_v17, %v70_v17 }
  0x2a   :  { %1024 = vmatpush3.bf16.msra.mxu1 %v1137_v26  ;;  %1003 = vmatprep.subr.bf16.mxu0 %v1138_v27  ;;  %v1180_v26 = vld [vmem:[%s1328_s3] sm:$0xff]   ;;  %v1220_v27 = vmov 0.0   ;;  %v1183_v30 = vld [vmem:[%s1328_s3 + $0x18] sm:$0xff]  }
  0x2b   :  { %1025 = vmatprep.subr.bf16.mxu1 %v1139_v28  ;;  %v93_v22 = vpack.c.bf16 %v78_v19, %v78_v19  ;;  %v79_v23 = vcombine.high %v77_v20, %v77_v20  ;;  %v94_v24 = vpack.c.bf16 %v77_v20, %v77_v20  ;;  %v1181_v28 = vld [vmem:[%s1328_s3 + $0x8] sm:$0xff]  }
  0x2d   :  { %1004 = vmatpush3.bf16.msra.mxu0 %v1140_v31  ;;  %v95_v25 = vpack.c.bf16 %v79_v23, %v79_v23  ;;  %v1184_v31 = vld [vmem:[%s1328_s3 + $0x20] sm:$0xff]  }
  0x2e   :  { %1026 = vmatpush3.bf16.msra.mxu1 %v1141_v32  ;;  %1005 = vmatprep.subr.bf16.mxu0 %v1142_v33  ;;  %v1185_v32 = vld [vmem:[%s1328_s3 + $0x28] sm:$0xff]   ;;  %v1186_v33 = vld [vmem:[%s1328_s3 + $0x30] sm:$0xff]  }
  0x2f   :  { %1027 = vmatprep.subr.bf16.mxu1 %v1143_v34  ;;  %v1187_v34 = vld [vmem:[%s1328_s3 + $0x38] sm:$0xff]  }
  0x31   :  { %1006 = vmatpush3.bf16.msra.mxu0 %v1144_v36  ;;  %v916_v36 = vld [vmem:[%s1327_s2] ss:$0 sm:$0xff] }
  0x32   :  { %1028 = vmatpush3.bf16.msra.mxu1 %v1145_v37  ;;  %1035 = vmatprep.subr.bf16.mxu0 %v1147_v41 }
  0x33   :  { %1057 = vmatprep.subr.bf16.mxu1 %v1148_v42 }
  0x34   :  { %648 = vmatmul.mubr.bf16.vlgmr.msra.gmra.mrb[0].mxu0 %v88_v45 }
  0x35   :  { %1036 = vmatpush3.bf16.msra.mxu0 %v1149_v46  ;;  %688 = vmatmul.mubr.bf16.vlgmr.msra.gmra.mrb[0].mxu1 %v90_v50 }
  0x36   :  { %1037 = vmatprep.subr.bf16.mxu0 %v1151_v51  ;;  %1058 = vmatpush3.bf16.msra.mxu1 %v1150_v49 }
  0x37   :  { %1059 = vmatprep.subr.bf16.mxu1 %v1152_v53  ;;  %727 = vmatprep.mubr.bf16.mxu0 %v93_v22 }
  0x38   :  { %767 = vmatprep.mubr.bf16.mxu1 %v95_v25 }
  0x39   :  { %1038 = vmatpush3.bf16.msra.mxu0 %v1153_v54 }
  0x3a   :  { %1039 = vmatprep.subr.bf16.mxu0 %v1155_v56  ;;  %1060 = vmatpush3.bf16.msra.mxu1 %v1154_v55 }
  0x3b   :  { %1061 = vmatprep.subr.bf16.mxu1 %v1156_v57 }
  0x3d   :  { %1040 = vmatpush3.bf16.msra.mxu0 %v1157_v58 }
  0x3e   :  { %1041 = vmatprep.subr.bf16.mxu0 %v1159_v60  ;;  %1062 = vmatpush3.bf16.msra.mxu1 %v1158_v59 }
  0x3f   :  { %1063 = vmatprep.subr.bf16.mxu1 %v1160_v61 }
  0x41   :  { %1042 = vmatpush3.bf16.msra.mxu0 %v1161_v62  ;;  %v981_v62 = vld [vmem:[%s1329_s4] ss:$0 sm:$0xff] }
  0x42   :  { %1043 = vmatprep.subr.bf16.mxu0 %v1163_v0  ;;  %1064 = vmatpush3.bf16.msra.mxu1 %v1162_v63 }
  0x43   :  { %1065 = vmatprep.subr.bf16.mxu1 %v1164_v1 }
  0x45   :  { %1044 = vmatpush3.bf16.msra.mxu0 %v1165_v2 }
  0x46   :  { %1045 = vmatprep.subr.bf16.mxu0 %v1167_v4  ;;  %1066 = vmatpush3.bf16.msra.mxu1 %v1166_v3  ;;  %v990_v3 = vld [vmem:[%s1330_s5] ss:$0 sm:$0xff] }
  0x47   :  { %1067 = vmatprep.subr.bf16.mxu1 %v1168_v5 }
  0x49   :  { %1046 = vmatpush3.bf16.msra.mxu0 %v1169_v6 }
  0x4a   :  { %1047 = vmatprep.subr.bf16.mxu0 %v1171_v8  ;;  %1068 = vmatpush3.bf16.msra.mxu1 %v1170_v7  ;;  %v902_v8 = vstv %s1331_s6 }
  0x4b   :  { %1069 = vmatprep.subr.bf16.mxu1 %v1172_v9 }
  0x4d   :  { %1048 = vmatpush3.bf16.msra.mxu0 %v1173_v10 }
  0x4e   :  { %1049 = vmatprep.subr.bf16.mxu0 %v1175_v12  ;;  %1070 = vmatpush3.bf16.msra.mxu1 %v1174_v11 }
  0x4f   :  { %1071 = vmatprep.subr.bf16.mxu1 %v1176_v13 }
  0x51   :  { %1050 = vmatpush3.bf16.msra.mxu0 %v1177_v14 }
  0x52   :  { %1072 = vmatpush3.bf16.msra.mxu1 %v1178_v16  ;;  %1088 = vmatprep.subr.bf16.mxu0 %v1220_v27 }
  0x54   :  { %728 = vmatmul.mubr.bf16.vlgmr.msra.gmra.mrb[4].mxu0 %v92_v21 }
  0x55   :  { %768 = vmatmul.mubr.bf16.vlgmr.msra.gmra.mrb[4].mxu1 %v94_v24  ;;  %1089 = vmatpush3.bf16.msra.mxu0 %v1180_v26 }
  0x56   :  { %1090 = vmatprep.subr.bf16.mxu0 %v1220_v27  ;;  %1104 = vmatprep.mubr.msk.bf16.mxu0 %vm1221_vm0, %v1220_v27 }
  0x59   :  { %1091 = vmatpush3.bf16.msra.mxu0 %v1181_v28 }
  0x5a   :  { %1092 = vmatprep.subr.bf16.mxu0 %v1220_v27 }
  0x5d   :  { %1093 = vmatpush3.bf16.msra.mxu0 %v1182_v29 }
  0x5e   :  { %1094 = vmatprep.subr.bf16.mxu0 %v1220_v27 }
  0x61   :  { %1095 = vmatpush3.bf16.msra.mxu0 %v1183_v30 }
  0x62   :  { %1096 = vmatprep.subr.bf16.mxu0 %v1220_v27 }
  0x65   :  { %1097 = vmatpush3.bf16.msra.mxu0 %v1184_v31 }
  0x66   :  { %1098 = vmatprep.subr.bf16.mxu0 %v1220_v27 }
  0x69   :  { %1099 = vmatpush3.bf16.msra.mxu0 %v1185_v32 }
  0x6a   :  { %1100 = vmatprep.subr.bf16.mxu0 %v1220_v27 }
  0x6d   :  { %1101 = vmatpush3.bf16.msra.mxu0 %v1186_v33 }
  0x6e   :  { %1102 = vmatprep.subr.bf16.mxu0 %v1220_v27 }
  0x71   :  { %1103 = vmatpush3.bf16.msra.mxu0 %v1187_v34 }
 0x107   :  { %v1007_v35 = vpop.f32.mrb[0].mxu0 }
 0x108   :  { %v1008_v37 = vpop.f32.mrb[1].mxu0  ;;  %v1029_v38 = vpop.f32.mrb[0].mxu1 }
 0x109   :  { %v1009_v39 = vadd.f32 %v1008_v37, %v1007_v35  ;;  %v1010_v40 = vpop.f32.mrb[2].mxu0  ;;  %v1030_v41 = vpop.f32.mrb[1].mxu1 }
 0x10a   :  { %v1011_v42 = vpop.f32.mrb[3].mxu0  ;;  %v1031_v44 = vadd.f32 %v1030_v41, %v1029_v38  ;;  %v1032_v45 = vpop.f32.mrb[2].mxu1 }
 0x10b   :  { %v650_v43 = vadd.f32 %v1009_v39, %v916_v36  ;;  %v1033_v46 = vpop.f32.mrb[3].mxu1 }
 0x10d   :  { %v690_v47 = vadd.f32 %v1031_v44, %v650_v43 }
 0x127   :  { %v1051_v48 = vpop.f32.mrb[4].mxu0 }
 0x128   :  { %v1052_v49 = vpop.f32.mrb[5].mxu0  ;;  %v1073_v50 = vpop.f32.mrb[4].mxu1 }
 0x129   :  { %v1053_v51 = vadd.f32 %v1052_v49, %v1051_v48  ;;  %v1054_v52 = vpop.f32.mrb[6].mxu0  ;;  %v1074_v53 = vpop.f32.mrb[5].mxu1 }
 0x12a   :  { %v1055_v54 = vpop.f32.mrb[7].mxu0  ;;  %v1075_v56 = vadd.f32 %v1074_v53, %v1073_v50  ;;  %v1076_v57 = vpop.f32.mrb[6].mxu1 }
 0x12b   :  { %v730_v55 = vadd.f32 %v1053_v51, %v690_v47  ;;  %v1077_v58 = vpop.f32.mrb[7].mxu1 }
 0x12d   :  { %v770_v59 = vadd.f32 %v1075_v56, %v730_v55 }
 0x12f   :  { %v775_v60 = vmax.f32 %v770_v59, 0.0 }
 0x131   :  { %v776_v61 = vpack.c.bf16 %v775_v60, %v775_v60 }
 0x133   :  { %1105 = vmatmul.mubr.bf16.vlgmr.msra.gmra.mrb[8].mxu0 %v776_v61 }
 0x206   :  { %v882_v63 = vpop.f32.mrb[8].mxu0 }
 0x207   :  { %v883_v0 = vadd.f32 %v981_v62, %v882_v63  ;;  %v1106_v1 = vpop.f32.mrb[9].mxu0 }
 0x208   :  { %v885_v2 = vpop.f32.mrb[10].mxu0 }
 0x209   :  { %v888_v4 = vmax.f32 %v883_v0, 0.0  ;;  %v1107_v5 = vpop.f32.mrb[11].mxu0 }
 0x20b   :  { %v896_v6 = vmul.f32 %v990_v3, %v888_v4 }
 0x20d   :  { %v898_v7 = vsel %vm897_vm1, %v896_v6, 0.0 }
 0x20e   :  { %899 = vadd.xlane.f32.xlu0 %v898_v7 }
 0x29b   :  { %v900_v9 = vpop.xlane.xlu0 %899 }
 0x29c   :  { %v903_v10 = vadd.f32 %v902_v8, %v900_v9 }
 0x29e   :  { %v904_v11 = vsub.f32 0.0, %v903_v10 }
 0x2a0   :  { %v905_v12 = vmul.f32 1.442695, %v904_v11 }
 0x2a2   :  { %1188 = vpow2.f32 %v905_v12 }
 0x2ac   :  { %v1189_v13 = vpop.eup %1188 }
 0x2ad   :  { %v907_v14 = vadd.f32 1.0, %v1189_v13 }
 0x2af   :  { %1190 = vrcp.f32 %v907_v14 }
 0x2b9   :  { %v1191_v15 = vpop.eup %1190 }
 0x2ba   :  { %910 = vst.msk [vmem:[%s1332_s7] sm:$0x3] %vm909_vm2, %v1191_v15 }
 0x2bb   :  { %915 = vsyncpa [#allocation4], 1 }

</bundles_post_ra>
